<compile_context>
chip_gen: v7x
topology: tpu7x:2x2x1
jax: 0.10.0
libtpu: 0.0.40
codegen_flags: <defaults>
</compile_context>

<pallas_src>
import functools

import jax
import jax.numpy as jnp
from jax.experimental import pallas as pl
from jax.experimental.pallas import tpu as pltpu


def _round_up(n: int, m: int) -> int:
    return ((n + m - 1) // m) * m


def mlp_kernel(x_ref, w1_ref, b1_ref, w2_ref, b2_ref, o_ref):
    # x arrives as f32 (no wrapper pad/cast pass); cast to the matmul dtype here.
    x = x_ref[...].astype(w1_ref.dtype)
    # fc1 on the MXU: bf16 operands, f32 accumulation.
    h = jnp.dot(x, w1_ref[...], preferred_element_type=jnp.float32)
    # Bias add + ReLU stay in f32 on the VPU (v5e has no bf16 VALU).
    h = jnp.maximum(h + b1_ref[...], 0.0)
    # fc2 on the MXU: f32 accumulate, cast activations back to matmul dtype.
    y = jnp.dot(h.astype(w2_ref.dtype), w2_ref[...],
                preferred_element_type=jnp.float32)
    # Lane-dense unmasked store (Cp multiple of 128); cast only at the store.
    o_ref[...] = (y + b2_ref[...]).astype(o_ref.dtype)


def prepare_params(w1, b1, w2, b2, *, matmul_dtype=jnp.bfloat16):
    """One-time pad + cast of the weights (hoisted out of the per-call path).

    Zero padding of H and C is mathematically exact for relu(x@W1+b1)@W2+b2.
    The contraction dim D of fc1 is left unpadded (x streams in unpadded).
    """
    D, H = w1.shape
    C = w2.shape[1]
    Hp = _round_up(H, 128)
    Cp = _round_up(C, 128)
    w1_p = jnp.pad(w1, ((0, 0), (0, Hp - H))).astype(matmul_dtype)        # (D, Hp)
    w2_p = jnp.pad(w2, ((0, Hp - H), (0, Cp - C))).astype(matmul_dtype)   # (Hp, Cp)
    b1_p = jnp.pad(b1.reshape(1, H), ((0, 0), (0, Hp - H))).astype(jnp.float32)
    b2_p = jnp.pad(b2.reshape(1, C), ((0, 0), (0, Cp - C))).astype(jnp.float32)
    return w1_p, b1_p, w2_p, b2_p


@functools.partial(jax.jit,
                   static_argnames=("classes", "block_batch", "out_dtype"))
def net_forward(x, w1_p, b1_p, w2_p, b2_p, *, classes,
                block_batch=128, out_dtype=jnp.bfloat16):
    """Pallas fused MLP forward: relu(x @ W1 + b1) @ W2 + b2 (PyTorch Net)."""
    B, D = x.shape
    Dw, Hp = w1_p.shape
    Hp2, Cp = w2_p.shape
    assert Dw == D and Hp2 == Hp
    C = classes

    # Batch tile: multiple of 16 sublanes (bf16 packs 2 rows/sublane); default
    # 128 so typical batches give each TensorCore >= 2 grid steps (prefetch
    # overlap on v7x megacore).
    TB = min(block_batch, _round_up(B, 16))
    Bp = _round_up(B, TB)
    if Bp != B:
        x = jnp.pad(x, ((0, Bp - B), (0, 0)))
    grid = (Bp // TB,)

    # VMEM budget: single-buffered weights + double-buffered x/out tiles
    # + f32 h intermediate. Cap at 64 MiB so the limit is valid on v7x too.
    out_bytes = jax.dtypes.canonicalize_dtype(out_dtype).itemsize
    w_bytes = w1_p.dtype.itemsize
    est = ((D * Hp + Hp * Cp) * w_bytes + (Hp + Cp) * 4
           + 2 * TB * D * x.dtype.itemsize
           + 2 * TB * Cp * out_bytes
           + TB * Hp * 4)
    vmem_limit = int(min(64 << 20, max(32 << 20, 2 * est)))
    # TODO(synk): for very large hidden sizes (resident weights >~24 MiB) add an
    # Hp grid axis ("arbitrary") with an f32 (TB, Cp) scratch accumulator so the
    # kernel still fits v7x's 64 MiB VMEM instead of assuming weights-resident.

    resident = dict(pipeline_mode=pl.Buffered(1))  # constant index_map: 1 buffer

    out_p = pl.pallas_call(
        mlp_kernel,
        out_shape=jax.ShapeDtypeStruct((Bp, Cp), out_dtype),
        grid_spec=pltpu.PrefetchScalarGridSpec(
            num_scalar_prefetch=0,
            grid=grid,
            in_specs=[
                # Activations: f32, batch-tiled only; last dim = full D (allowed
                # by the (8,128)-or-full-dim rule), cast to bf16 in the kernel.
                pl.BlockSpec((TB, D), lambda i: (i, 0)),
                # Weights & biases: same block every step -> VMEM-resident,
                # single-buffered.
                pl.BlockSpec((D, Hp), lambda i: (0, 0), **resident),
                pl.BlockSpec((1, Hp), lambda i: (0, 0), **resident),
                pl.BlockSpec((Hp, Cp), lambda i: (0, 0), **resident),
                pl.BlockSpec((1, Cp), lambda i: (0, 0), **resident),
            ],
            out_specs=pl.BlockSpec((TB, Cp), lambda i: (i, 0)),
        ),
        compiler_params=pltpu.CompilerParams(
            # Batch tiles are independent -> shard across TCs (megacore / v7x).
            dimension_semantics=("parallel",),
            vmem_limit_bytes=vmem_limit,
        ),
    )(x, w1_p, b1_p, w2_p, b2_p)

    # Strip batch/lane padding.
    return out_p[:B, :C]


def init_params(key, dim, hidden, classes):
    """Deterministic init mirroring nn.Linear's U(-1/sqrt(fan_in), 1/sqrt(fan_in)).

    Weights are stored transposed vs. torch ((in, out)) so the kernel does x @ W.
    """
    k1, k2, k3, k4 = jax.random.split(key, 4)
    lim1 = 1.0 / jnp.sqrt(dim)
    lim2 = 1.0 / jnp.sqrt(hidden)
    w1 = jax.random.uniform(k1, (dim, hidden), jnp.float32, -lim1, lim1)
    b1 = jax.random.uniform(k2, (hidden,), jnp.float32, -lim1, lim1)
    w2 = jax.random.uniform(k3, (hidden, classes), jnp.float32, -lim2, lim2)
    b2 = jax.random.uniform(k4, (classes,), jnp.float32, -lim2, lim2)
    return w1, b1, w2, b2


if __name__ == "__main__":
    # Net(dim, classes, hidden): x is (batch, dim). B=512 with TB=128 gives
    # 4 grid steps (2 per TensorCore on v7x) while staying small.
    batch, dim, hidden, classes = 512, 32, 32, 8
    key = jax.random.PRNGKey(0)
    kx, kp = jax.random.split(key)
    x = jax.random.normal(kx, (batch, dim), jnp.float32)
    w1, b1, w2, b2 = init_params(kp, dim, hidden, classes)

    # Pad + cast the weights exactly once (not per forward call).
    params_p = prepare_params(w1, b1, w2, b2)
    params_p = jax.block_until_ready(params_p)
    w1_p, b1_p, w2_p, b2_p = params_p

    out = net_forward(x, w1_p, b1_p, w2_p, b2_p, classes=classes)
    out = jax.block_until_ready(out)

    # Pure-JAX f32 reference. Kernel uses bf16 matmul inputs, f32 accumulation,
    # and a bf16 output store, so compare with a bf16-appropriate tolerance.
    ref = jnp.maximum(x @ w1 + b1, 0.0) @ w2 + b2
    assert out.shape == (batch, classes)
    out_f32 = out.astype(jnp.float32)
    err = float(jnp.max(jnp.abs(out_f32 - ref)))
    assert jnp.allclose(out_f32, ref, atol=3e-2, rtol=3e-2), f"max abs err {err}"
    print("KERNEL_OK")
</pallas_src>

<mosaic_0001>
module attributes {stable_mosaic.version = 11 : i64} {
  func.func @mlp_kernel(%arg0: i32, %arg1: memref<128x32xf32, #tpu.memory_space<vmem>>, %arg2: memref<32x128xbf16, #tpu.memory_space<vmem>>, %arg3: memref<1x128xf32, #tpu.memory_space<vmem>>, %arg4: memref<128x128xbf16, #tpu.memory_space<vmem>>, %arg5: memref<1x128xf32, #tpu.memory_space<vmem>>, %arg6: memref<128x128xbf16, #tpu.memory_space<vmem>>) attributes {dimension_semantics = [#tpu.dimension_semantics<parallel>], iteration_bounds = array<i64: 4>, scalar_prefetch = 0 : i64, scratch_operands = 0 : i64, tpu.core_type = #tpu.core_type<tc>, window_params = [{transform_indices = @transform_0, window_bounds = array<i64: 128, 32>}, {pipeline_mode = #tpu.pipeline_mode<synchronous>, transform_indices = @transform_1, window_bounds = array<i64: 32, 128>}, {pipeline_mode = #tpu.pipeline_mode<synchronous>, transform_indices = @transform_2, window_bounds = array<i64: 1, 128>}, {pipeline_mode = #tpu.pipeline_mode<synchronous>, transform_indices = @transform_3, window_bounds = array<i64: 128, 128>}, {pipeline_mode = #tpu.pipeline_mode<synchronous>, transform_indices = @transform_4, window_bounds = array<i64: 1, 128>}, {transform_indices = @transform_5, window_bounds = array<i64: 128, 128>}]} {
    %c0 = arith.constant 0 : index
    %c0_0 = arith.constant 0 : index
    %0 = vector.load %arg1[%c0, %c0_0] : memref<128x32xf32, #tpu.memory_space<vmem>>, vector<128x32xf32>
    %1 = arith.truncf %0 : vector<128x32xf32> to vector<128x32xbf16>
    %c0_1 = arith.constant 0 : index
    %c0_2 = arith.constant 0 : index
    %2 = vector.load %arg2[%c0_1, %c0_2] : memref<32x128xbf16, #tpu.memory_space<vmem>>, vector<32x128xbf16>
    %cst = arith.constant dense<0.000000e+00> : vector<128x128xf32>
    %3 = tpu.matmul %1, %2, %cst {dimension_numbers = #tpu.dot_dimension_numbers<[1], [0], [0], [1], [0, 0, 1, 1], [], []>} : vector<128x32xbf16>, vector<32x128xbf16>, vector<128x128xf32> -> vector<128x128xf32>
    %c0_3 = arith.constant 0 : index
    %c0_4 = arith.constant 0 : index
    %4 = vector.load %arg3[%c0_3, %c0_4] : memref<1x128xf32, #tpu.memory_space<vmem>>, vector<1x128xf32>
    %5 = vector.broadcast %4 : vector<1x128xf32> to vector<128x128xf32>
    %6 = arith.addf %3, %5 : vector<128x128xf32>
    %cst_5 = arith.constant 0.000000e+00 : f32
    %7 = vector.broadcast %cst_5 : f32 to vector<128x128xf32>
    %8 = arith.maximumf %6, %7 : vector<128x128xf32>
    %9 = arith.truncf %8 : vector<128x128xf32> to vector<128x128xbf16>
    %c0_6 = arith.constant 0 : index
    %c0_7 = arith.constant 0 : index
    %10 = vector.load %arg4[%c0_6, %c0_7] : memref<128x128xbf16, #tpu.memory_space<vmem>>, vector<128x128xbf16>
    %cst_8 = arith.constant dense<0.000000e+00> : vector<128x128xf32>
    %11 = tpu.matmul %9, %10, %cst_8 {dimension_numbers = #tpu.dot_dimension_numbers<[1], [0], [0], [1], [0, 0, 1, 1], [], []>} : vector<128x128xbf16>, vector<128x128xbf16>, vector<128x128xf32> -> vector<128x128xf32>
    %c0_9 = arith.constant 0 : index
    %c0_10 = arith.constant 0 : index
    %12 = vector.load %arg5[%c0_9, %c0_10] : memref<1x128xf32, #tpu.memory_space<vmem>>, vector<1x128xf32>
    %13 = vector.broadcast %12 : vector<1x128xf32> to vector<128x128xf32>
    %14 = arith.addf %11, %13 : vector<128x128xf32>
    %15 = arith.truncf %14 : vector<128x128xf32> to vector<128x128xbf16>
    %c0_11 = arith.constant 0 : index
    %c0_12 = arith.constant 0 : index
    %16 = vector.load %arg6[%c0_11, %c0_12] : memref<128x128xbf16, #tpu.memory_space<vmem>>, vector<128x128xbf16>
    tpu.vector_store %arg6[%c0_11, %c0_12], %15 {strides = array<i32>} : memref<128x128xbf16, #tpu.memory_space<vmem>>, vector<128x128xbf16>,
    return
  }
  func.func @transform_0(%arg0: i32) -> (i32, i32) {
    %c0_i32 = arith.constant 0 : i32
    %c0_i32_0 = arith.constant 0 : i32
    return %arg0, %c0_i32 : i32, i32
  }
  func.func @transform_1(%arg0: i32) -> (i32, i32) {
    %c0_i32 = arith.constant 0 : i32
    %c0_i32_0 = arith.constant 0 : i32
    %c0_i32_1 = arith.constant 0 : i32
    return %c0_i32, %c0_i32_0 : i32, i32
  }
  func.func @transform_2(%arg0: i32) -> (i32, i32) {
    %c0_i32 = arith.constant 0 : i32
    %c0_i32_0 = arith.constant 0 : i32
    %c0_i32_1 = arith.constant 0 : i32
    return %c0_i32, %c0_i32_0 : i32, i32
  }
  func.func @transform_3(%arg0: i32) -> (i32, i32) {
    %c0_i32 = arith.constant 0 : i32
    %c0_i32_0 = arith.constant 0 : i32
    %c0_i32_1 = arith.constant 0 : i32
    return %c0_i32, %c0_i32_0 : i32, i32
  }
  func.func @transform_4(%arg0: i32) -> (i32, i32) {
    %c0_i32 = arith.constant 0 : i32
    %c0_i32_0 = arith.constant 0 : i32
    %c0_i32_1 = arith.constant 0 : i32
    return %c0_i32, %c0_i32_0 : i32, i32
  }
  func.func @transform_5(%arg0: i32) -> (i32, i32) {
    %c0_i32 = arith.constant 0 : i32
    %c0_i32_0 = arith.constant 0 : i32
    return %arg0, %c0_i32 : i32, i32
  }
}

</mosaic_0001>

<bundles_post_ra>
// kernel: net_forward.1
= control target key start
LH: loop header
LB: loop body
LE: loop exit
PB: predicated region body
PF: predicated region fallthrough
CT: control target
= control target key end

     0   :  { %s986_s18 = smov 0   ;;  %s1079_s0 = inlined_call_operand.vmem [shape: f32[512,32], index: 0, kind: input, shape index: {}]   ;;  %s1080_s1 = inlined_call_operand.vmem [shape: bf16[32,128], index: 1, kind: input, shape index: {}]   ;;  %s1081_s2 = inlined_call_operand.vmem [shape: f32[1,128], index: 2, kind: input, shape index: {}]   ;;  %s1082_s3 = inlined_call_operand.vmem [shape: bf16[128,128], index: 3, kind: input, shape index: {}]   ;;  %s1083_s4 = inlined_call_operand.vmem [shape: f32[1,128], index: 4, kind: input, shape index: {}]   ;;  %s1084_s5 = inlined_call_operand.vmem [shape: bf16[512,128], index: 5, kind: output, shape index: {}]  }
   0x1 LB: > { %s726_s19 = sadd.s32 4294967295, %s954_s18   ;;  %p730_p0 = scmp.ge.s32.totalorder %s954_s18, 1  ;;  %s954_s18 = sphi %s986_s18, %s15_s18  }
   0x2   : > { %p188_p1 = scmp.lt.s32.totalorder %s954_s18, 5 }
   0x4   : > { %p189_p2 = pnand %p730_p0, %p188_p1 }
   0x5   : > { %v938_v0 = vld [vmem:[%s1080_s1] sm:$0xff] (!%p189_p2)   ;;  %s731_s22 = sshll.u32 (!%p189_p2), %s726_s19, 4  ;;  %v939_v1 = vld [vmem:[%s1080_s1 + $0x8] sm:$0xff] (!%p189_p2)   ;;  %v942_v4 = vld [vmem:[%s1082_s3 + $0x10] sm:$0xff] (!%p189_p2)   ;;  %vm276_vm0 = vcmask (!%p189_p2), 261120  }
   0x6   : > { %192 = sbr.rel (%p189_p2) target bundleno = 486 (0x1e6), region = 40  ;;  %p217_p3 = scmp.lt.s32.totalorder (!%p189_p2), %s731_s22, 63  ;;  %862 = vmatprep.subr.bf16.mxu0 (!%p189_p2), %v938_v0  ;;  %v940_v2 = vld [vmem:[%s1082_s3] sm:$0xff] (!%p189_p2)   ;;  %v941_v3 = vld [vmem:[%s1082_s3 + $0x8] sm:$0xff] (!%p189_p2)   ;;  %v943_v16 = vld [vmem:[%s1082_s3 + $0x18] sm:$0xff] (!%p189_p2)  }
   0x7   : > { %863 = vmatpush3.bf16.msra.mxu0 (!%p189_p2), %v938_v0  ;;  %914 = vmatprep.subr.bf16.mxu1 (!%p189_p2), %v940_v2  ;;  %v944_v21 = vld [vmem:[%s1082_s3 + $0x20] sm:$0xff] (!%p189_p2)   ;;  %v945_v24 = vld [vmem:[%s1082_s3 + $0x28] sm:$0xff] (!%p189_p2)   ;;  %v946_v32 = vld [vmem:[%s1082_s3 + $0x30] sm:$0xff] (!%p189_p2)  }
   0x8   : > { %864 = vmatprep.subr.bf16.mxu0 (!%p189_p2), %v939_v1  ;;  %922 = vmatpush3.bf16.msra.mxu1 (!%p189_p2), %v940_v2  ;;  %v947_v33 = vld [vmem:[%s1082_s3 + $0x38] sm:$0xff] (!%p189_p2)   ;;  %v735_v34 = vld [vmem:[%s1081_s2] ss:$0 sm:$0xff] (!%p189_p2) }
   0x9   : > { %915 = vmatprep.subr.bf16.mxu1 (!%p189_p2), %v941_v3 }
   0xb   : > { %865 = vmatpush3.bf16.msra.mxu0 (!%p189_p2), %v939_v1 }
   0xc   : > { %882 = vmatprep.subr.bf16.mxu0 (!%p189_p2), %v940_v2  ;;  %923 = vmatpush3.bf16.msra.mxu1 (!%p189_p2), %v941_v3 }
   0xd   : > { %s1086_s22 = smov (!%p217_p3, %s731_s22), 63  ;;  %916 = vmatprep.subr.bf16.mxu1 %v942_v4 }
   0xe   : > { %s732_s29 = sshll.u32 %s1086_s22, 3  ;;  %s734_s26 = sshll.u32 %s1086_s22, 2 }
   0xf   : > { %s1012_s7 = scalar_lea.vmem %s1079_s0, %s732_s29  ;;  %s1066_s29 = scalar_lea.vmem %s1084_s5, %s734_s26 }
  0x10   : > { %v229_v5 = vld [vmem:[%s1012_s7] sm:$0xff]  ;;  %v230_v6 = vld [vmem:[%s1012_s7 + $0x8] sm:$0xff]  ;;  %v231_v7 = vld [vmem:[%s1012_s7 + $0x10] sm:$0xff]  ;;  %924 = vmatpush3.bf16.msra.mxu1 %v942_v4 }
  0x11   : > { %v245_v8 = vpack.c.bf16 %v230_v6, %v229_v5  ;;  %v232_v9 = vld [vmem:[%s1012_s7 + $0x18] sm:$0xff]  ;;  %v233_v10 = vld [vmem:[%s1012_s7 + $0x20] sm:$0xff]  ;;  %v234_v11 = vld [vmem:[%s1012_s7 + $0x28] sm:$0xff]  ;;  %917 = vmatprep.subr.bf16.mxu1 %v943_v16 }
  0x12   : > { %v246_v12 = vpack.c.bf16 %v232_v9, %v231_v7  ;;  %v247_v13 = vpack.c.bf16 %v234_v11, %v233_v10  ;;  %v235_v14 = vld [vmem:[%s1012_s7 + $0x30] sm:$0xff]  ;;  %v236_v15 = vld [vmem:[%s1012_s7 + $0x38] sm:$0xff]  ;;  %v237_v17 = vld [vmem:[%s1012_s7 + $0x40] sm:$0xff] }
  0x13   : > { %866 = vmatprep.mubr.msk.bf16.mxu0 %vm276_vm0, %v245_v8  ;;  %v238_v18 = vld [vmem:[%s1012_s7 + $0x48] sm:$0xff]  ;;  %v248_v19 = vpack.c.bf16 %v236_v15, %v235_v14  ;;  %v239_v22 = vld [vmem:[%s1012_s7 + $0x50] sm:$0xff]  ;;  %v240_v23 = vld [vmem:[%s1012_s7 + $0x58] sm:$0xff] }
  0x14   : > { %867 = vmatmul.mubr.msk.bf16.vlgmr.msra.gmra.mrb[0].mxu0 %vm276_vm0, %v246_v12  ;;  %v249_v20 = vpack.c.bf16 %v238_v18, %v237_v17  ;;  %925 = vmatpush3.bf16.msra.mxu1 %v943_v16  ;;  %v241_v25 = vld [vmem:[%s1012_s7 + $0x60] sm:$0xff]  ;;  %v242_v26 = vld [vmem:[%s1012_s7 + $0x68] sm:$0xff]  ;;  %v250_v27 = vpack.c.bf16 %v240_v23, %v239_v22  ;;  %v243_v29 = vld [vmem:[%s1012_s7 + $0x70] sm:$0xff] }
  0x15   : > { %870 = vmatprep.mubr.msk.bf16.mxu0 %vm276_vm0, %v247_v13  ;;  %883 = vmatpush3.bf16.msra.mxu0 %v940_v2  ;;  %v251_v28 = vpack.c.bf16 %v242_v26, %v241_v25  ;;  %v244_v30 = vld [vmem:[%s1012_s7 + $0x78] sm:$0xff] }
  0x16   : > { %884 = vmatprep.subr.bf16.mxu0 %v941_v3  ;;  %918 = vmatprep.subr.bf16.mxu1 %v944_v21  ;;  %v252_v31 = vpack.c.bf16 %v244_v30, %v243_v29 }
  0x18   : > { %926 = vmatpush3.bf16.msra.mxu1 %v944_v21 }
  0x19   : > { %885 = vmatpush3.bf16.msra.mxu0 %v941_v3  ;;  %919 = vmatprep.subr.bf16.mxu1 %v945_v24 }
  0x1a   : > { %886 = vmatprep.subr.bf16.mxu0 %v942_v4 }
  0x1c   : > { %871 = vmatmul.mubr.msk.bf16.gmra.mrb[4].mxu0 %vm276_vm0, %v248_v19  ;;  %927 = vmatpush3.bf16.msra.mxu1 %v945_v24 }
  0x1d   : > { %874 = vmatprep.mubr.msk.bf16.mxu0 %vm276_vm0, %v249_v20  ;;  %887 = vmatpush3.bf16.msra.mxu0 %v942_v4 }
  0x1e   : > { %888 = vmatprep.subr.bf16.mxu0 %v943_v16  ;;  %920 = vmatprep.subr.bf16.mxu1 %v946_v32 }
  0x20   : > { %928 = vmatpush3.bf16.msra.mxu1 %v946_v32 }
  0x21   : > { %889 = vmatpush3.bf16.msra.mxu0 %v943_v16  ;;  %921 = vmatprep.subr.bf16.mxu1 %v947_v33 }
  0x22   : > { %890 = vmatprep.subr.bf16.mxu0 %v944_v21 }
  0x24   : > { %875 = vmatmul.mubr.msk.bf16.gmra.mrb[8].mxu0 %vm276_vm0, %v250_v27  ;;  %929 = vmatpush3.bf16.msra.mxu1 %v947_v33 }
  0x25   : > { %878 = vmatprep.mubr.msk.bf16.mxu0 %vm276_vm0, %v251_v28  ;;  %891 = vmatpush3.bf16.msra.mxu0 %v944_v21  ;;  %v746_v28 = vld [vmem:[%s1083_s4] ss:$0 sm:$0xff] }
  0x26   : > { %892 = vmatprep.subr.bf16.mxu0 %v945_v24 }
  0x29   : > { %893 = vmatpush3.bf16.msra.mxu0 %v945_v24 }
  0x2a   : > { %894 = vmatprep.subr.bf16.mxu0 %v946_v32 }
  0x2c   : > { %879 = vmatmul.mubr.msk.bf16.gmra.mrb[12].mxu0 %vm276_vm0, %v252_v31 }
  0x2d   : > { %895 = vmatpush3.bf16.msra.mxu0 %v946_v32 }
  0x2e   : > { %896 = vmatprep.subr.bf16.mxu0 %v947_v33 }
  0x31   : > { %897 = vmatpush3.bf16.msra.mxu0 %v947_v33 }
  0xe7   : > { %v868_v35 = vpop.f32.mrb[0].mxu0 }
  0xe8   : > { %v344_v36 = vadd.f32 %v868_v35, %v735_v34  ;;  %v335_v37 = vpop.f32.mrb[1].mxu0 }
  0xe9   : > { %v336_v38 = vadd.f32 %v735_v34, %v335_v37  ;;  %v869_v39 = vpop.f32.mrb[2].mxu0 }
  0xea   : > { %v347_v40 = vadd.f32 %v869_v39, %v735_v34  ;;  %v338_v41 = vpop.f32.mrb[3].mxu0  ;;  %v400_v43 = vmax.f32 %v344_v36, 0.0 }
  0xeb   : > { %v339_v42 = vadd.f32 %v735_v34, %v338_v41  ;;  %v398_v45 = vmax.f32 %v336_v38, 0.0 }
  0xec   : > { %v401_v44 = vmax.f32 %v347_v40, 0.0 }
  0xed   : > { %v399_v46 = vmax.f32 %v339_v42, 0.0 }
  0xee   : > { %v415_v47 = vpack.c.bf16 %v401_v44, %v400_v43 }
  0xef   : > { %v414_v48 = vpack.c.bf16 %v399_v46, %v398_v45  ;;  %v872_v49 = vpop.f32.mrb[4].mxu0 }
  0xf0   : > { %v360_v50 = vadd.f32 %v872_v49, %v735_v34  ;;  %v351_v51 = vpop.f32.mrb[5].mxu0 }
  0xf1   : > { %v352_v52 = vadd.f32 %v735_v34, %v351_v51  ;;  %v873_v53 = vpop.f32.mrb[6].mxu0  ;;  %898 = vmatprep.mubr.bf16.mxu0 %v414_v48 }
  0xf2   : > { %v363_v54 = vadd.f32 %v873_v53, %v735_v34  ;;  %v354_v55 = vpop.f32.mrb[7].mxu0  ;;  %899 = vmatmul.mubr.bf16.vlgmr.msra.gmra.mrb[16].mxu0 %v415_v47  ;;  %v404_v57 = vmax.f32 %v360_v50, 0.0 }
  0xf3   : > { %v355_v56 = vadd.f32 %v735_v34, %v354_v55  ;;  %v402_v59 = vmax.f32 %v352_v52, 0.0 }
  0xf4   : > { %v405_v58 = vmax.f32 %v363_v54, 0.0 }
  0xf5   : > { %v403_v60 = vmax.f32 %v355_v56, 0.0 }
  0xf6   : > { %v417_v61 = vpack.c.bf16 %v405_v58, %v404_v57 }
  0xf7   : > { %v876_v62 = vpop.f32.mrb[8].mxu0  ;;  %v416_v63 = vpack.c.bf16 %v403_v60, %v402_v59 }
  0xf8   : > { %v376_v0 = vadd.f32 %v876_v62, %v735_v34  ;;  %v367_v1 = vpop.f32.mrb[9].mxu0 }
  0xf9   : > { %v368_v2 = vadd.f32 %v735_v34, %v367_v1  ;;  %v877_v3 = vpop.f32.mrb[10].mxu0  ;;  %902 = vmatprep.mubr.bf16.mxu1 %v416_v63 }
  0xfa   : > { %v379_v4 = vadd.f32 %v877_v3, %v735_v34  ;;  %v370_v5 = vpop.f32.mrb[11].mxu0  ;;  %903 = vmatmul.mubr.bf16.vlgmr.msra.gmra.mrb[0].mxu1 %v417_v61  ;;  %v408_v7 = vmax.f32 %v376_v0, 0.0 }
  0xfb   : > { %v371_v6 = vadd.f32 %v735_v34, %v370_v5  ;;  %v406_v9 = vmax.f32 %v368_v2, 0.0 }
  0xfc   : > { %v409_v8 = vmax.f32 %v379_v4, 0.0 }
  0xfd   : > { %v407_v10 = vmax.f32 %v371_v6, 0.0 }
  0xfe   : > { %v419_v11 = vpack.c.bf16 %v409_v8, %v408_v7 }
  0xff   : > { %v418_v12 = vpack.c.bf16 %v407_v10, %v406_v9  ;;  %v880_v13 = vpop.f32.mrb[12].mxu0 }
 0x100   : > { %v392_v14 = vadd.f32 %v880_v13, %v735_v34  ;;  %v383_v15 = vpop.f32.mrb[13].mxu0 }
 0x101   : > { %v384_v16 = vadd.f32 %v735_v34, %v383_v15  ;;  %v881_v17 = vpop.f32.mrb[14].mxu0  ;;  %906 = vmatprep.mubr.bf16.mxu1 %v418_v12 }
 0x102   : > { %v395_v18 = vadd.f32 %v881_v17, %v735_v34  ;;  %v386_v19 = vpop.f32.mrb[15].mxu0  ;;  %907 = vmatmul.mubr.bf16.gmra.mrb[4].mxu1 %v419_v11  ;;  %v412_v21 = vmax.f32 %v392_v14, 0.0 }
 0x103   : > { %v387_v20 = vadd.f32 %v735_v34, %v386_v19  ;;  %v410_v23 = vmax.f32 %v384_v16, 0.0 }
 0x104   : > { %v413_v22 = vmax.f32 %v395_v18, 0.0 }
 0x105   : > { %v411_v24 = vmax.f32 %v387_v20, 0.0 }
 0x106   : > { %v421_v25 = vpack.c.bf16 %v413_v22, %v412_v21 }
 0x107   : > { %v420_v26 = vpack.c.bf16 %v411_v24, %v410_v23 }
 0x109   : > { %910 = vmatprep.mubr.bf16.mxu1 %v420_v26 }
 0x10a   : > { %911 = vmatmul.mubr.bf16.gmra.mrb[8].mxu1 %v421_v25 }
 0x1c5   : > { %v900_v27 = vpop.f32.mrb[16].mxu0 }
 0x1c6   : > { %v527_v29 = vpop.f32.mrb[17].mxu0  ;;  %v536_v31 = vadd.f32 %v900_v27, %v746_v28 }
 0x1c7   : > { %v901_v30 = vpop.f32.mrb[18].mxu0  ;;  %v528_v34 = vadd.f32 %v746_v28, %v527_v29 }
 0x1c8   : > { %v539_v32 = vadd.f32 %v901_v30, %v746_v28  ;;  %v530_v33 = vpop.f32.mrb[19].mxu0 }
 0x1c9   : > { %v531_v35 = vadd.f32 %v746_v28, %v530_v33 }
 0x1ca   : > { %v797_v36 = vpack.c.bf16 %v539_v32, %v536_v31 }
 0x1cb   : > { %v792_v37 = vpack.c.bf16 %v531_v35, %v528_v34 }
 0x1cc   : > { %829 = vst [vmem:[%s1066_s29 + $0x8] sm:$0xff] %v797_v36  }
 0x1cd   : > { %793 = vst [vmem:[%s1066_s29] sm:$0xff] %v792_v37   ;;  %v904_v38 = vpop.f32.mrb[0].mxu1 }
 0x1ce   : > { %v543_v39 = vpop.f32.mrb[1].mxu1  ;;  %v552_v41 = vadd.f32 %v904_v38, %v746_v28 }
 0x1cf   : > { %v905_v40 = vpop.f32.mrb[2].mxu1  ;;  %v544_v44 = vadd.f32 %v746_v28, %v543_v39 }
 0x1d0   : > { %v555_v42 = vadd.f32 %v905_v40, %v746_v28  ;;  %v546_v43 = vpop.f32.mrb[3].mxu1 }
 0x1d1   : > { %v547_v45 = vadd.f32 %v746_v28, %v546_v43 }
 0x1d2   : > { %v807_v46 = vpack.c.bf16 %v555_v42, %v552_v41 }
 0x1d3   : > { %v802_v47 = vpack.c.bf16 %v547_v45, %v544_v44 }
 0x1d4   : > { %831 = vst [vmem:[%s1066_s29 + $0x18] sm:$0xff] %v807_v46  }
 0x1d5   : > { %830 = vst [vmem:[%s1066_s29 + $0x10] sm:$0xff] %v802_v47   ;;  %v908_v48 = vpop.f32.mrb[4].mxu1 }
 0x1d6   : > { %v559_v49 = vpop.f32.mrb[5].mxu1  ;;  %v568_v51 = vadd.f32 %v908_v48, %v746_v28 }
 0x1d7   : > { %v909_v50 = vpop.f32.mrb[6].mxu1  ;;  %v560_v54 = vadd.f32 %v746_v28, %v559_v49 }
 0x1d8   : > { %v571_v52 = vadd.f32 %v909_v50, %v746_v28  ;;  %v562_v53 = vpop.f32.mrb[7].mxu1 }
 0x1d9   : > { %v563_v55 = vadd.f32 %v746_v28, %v562_v53 }
 0x1da   : > { %v817_v56 = vpack.c.bf16 %v571_v52, %v568_v51 }
 0x1db   : > { %v812_v57 = vpack.c.bf16 %v563_v55, %v560_v54 }
 0x1dc   : > { %833 = vst [vmem:[%s1066_s29 + $0x28] sm:$0xff] %v817_v56  }
 0x1dd   : > { %832 = vst [vmem:[%s1066_s29 + $0x20] sm:$0xff] %v812_v57   ;;  %v912_v58 = vpop.f32.mrb[8].mxu1 }
 0x1de   : > { %v575_v59 = vpop.f32.mrb[9].mxu1  ;;  %v584_v61 = vadd.f32 %v912_v58, %v746_v28 }
 0x1df   : > { %v913_v60 = vpop.f32.mrb[10].mxu1  ;;  %v576_v0 = vadd.f32 %v746_v28, %v575_v59 }
 0x1e0   : > { %v587_v62 = vadd.f32 %v913_v60, %v746_v28  ;;  %v578_v63 = vpop.f32.mrb[11].mxu1 }
 0x1e1   : > { %v579_v1 = vadd.f32 %v746_v28, %v578_v63 }
 0x1e2   : > { %v827_v2 = vpack.c.bf16 %v587_v62, %v584_v61 }
 0x1e3   : > { %v822_v3 = vpack.c.bf16 %v579_v1, %v576_v0 }
 0x1e4   : > { %835 = vst [vmem:[%s1066_s29 + $0x38] sm:$0xff] %v827_v2  }
 0x1e5   : > { %834 = vst [vmem:[%s1066_s29 + $0x30] sm:$0xff] %v822_v3  }
 0x1e6 PF: > { %s15_s18 = sadd.s32 1, %s954_s18  }
 0x1e7   : > { %p12_p4 = scmp.ge.s32.totalorder %s15_s18, 6  }
 0x1e9   :  { %14 = sbr.rel (!%p12_p4) target bundleno = 1 (0x1), region = 70 }

</bundles_post_ra>
